<compile_context>
chip_gen: v7x
topology: tpu7x:2x2x1
jax: 0.10.0
libtpu: 0.0.40
codegen_flags: <defaults>
</compile_context>

<pallas_src>
import functools
import math

import numpy as np
import jax
import jax.numpy as jnp
from jax import lax
from jax.experimental import pallas as pl
from jax.experimental.pallas import tpu as pltpu

# ----- model hyper-parameters (synthetic, small) -----
P = 4                   # positional_dim
MODAL_DIMS = (8, 4)
F = sum(MODAL_DIMS)     # num_feat_dims = 12
D = P + F               # entity feature dim = 16
H = 64                  # hidden_dim
HEADS = 2
HD = H // HEADS         # head dim = 32
OUT = 3                 # output_dim (continuous actions)
OUT_PAD = 128           # lane-dense output width (wrapper slices [:, :OUT])
LN_EPS = 1e-5

# bf16 MXU operands, f32 accumulation. Elementwise math stays f32 (v5e has no
# bf16 VPU/EUP path).
MATMUL_DTYPE = jnp.bfloat16

# Rows of the bias / LayerNorm vector slab (shape (16, 4H), kept in f32).
R_B_EMB, R_B_SN, R_B_QKV, R_B_O, R_B_M1, R_B_M2, R_B_D1, R_B_D2 = range(8)
R_LN0G, R_LN0B, R_LN1G, R_LN1B, R_LN2G, R_LN2B = range(8, 14)


def _cdiv(a, b):
    return -(-a // b)


def _layernorm(x, g, b):
    mu = jnp.mean(x, axis=-1, keepdims=True)
    var = jnp.mean((x - mu) ** 2, axis=-1, keepdims=True)
    return (x - mu) * lax.rsqrt(var + LN_EPS) * g + b


# --------------------------------------------------------------------------
# Kernel
# --------------------------------------------------------------------------
def entity_attention_kernel(
    x_ref,          # (M, D)    M = BT * Np rows (BT whole batches per tile)
    bias_ref,       # (2M, M)   additive attn bias, stacked for the 2 fused heads
    w_emb_ref,      # (D, 2H)   fused self/node pos+feat embeddings   (bf16)
    w_sn_ref,       # (2H, 2H)  block-diag(self_embed, node_embed)    (bf16)
    w_qkv_ref,      # (2H, 3H)  [[Wq,0,0],[0,Wk,Wv]]                  (bf16)
    w_o_ref,        # (H, H)                                          (bf16)
    w_m1_ref,       # (H, 4H)                                         (bf16)
    w_m2_ref,       # (4H, H)                                         (bf16)
    w_d1_ref,       # (H, H)                                          (bf16)
    w_d2_ref,       # (H, OUT_PAD) zero-padded decider output layer   (bf16)
    vec_ref,        # (16, 4H)  biases + LayerNorm gammas/betas       (f32)
    act_ref,        # (M, OUT_PAD)
):
    M = x_ref.shape[0]
    x = x_ref[...].astype(jnp.float32)
    vec = vec_ref[...]

    def vrow(i, width):                  # (1, width) bias / LN vector
        return vec[i:i + 1, :width]

    def mm(a, w_ref):                    # bf16 MXU, f32 accumulation
        return jnp.dot(a.astype(MATMUL_DTYPE), w_ref[...].astype(MATMUL_DTYPE),
                       preferred_element_type=jnp.float32)

    # ---- fused input embeddings: [self | node] halves, one (M,16)x(16,128) ----
    emb = jax.nn.relu(mm(x, w_emb_ref) + vrow(R_B_EMB, 2 * H))
    # ---- fused self_embed / node_embed (block-diagonal (128,128)) ----
    h = jax.nn.relu(mm(emb, w_sn_ref) + vrow(R_B_SN, 2 * H))   # (M, 2H)
    self_h = h[:, :H]
    node_h = h[:, H:]

    # ---- ResidualAttentionBlock ----
    x1 = _layernorm(self_h, vrow(R_LN0G, H), vrow(R_LN0B, H))
    kv1 = _layernorm(node_h, vrow(R_LN1G, H), vrow(R_LN1B, H))

    # fused QKV: [x1 | kv1](M,128) @ (128,192) -> [q | k | v]
    qkv = mm(jnp.concatenate([x1, kv1], axis=-1), w_qkv_ref) + vrow(R_B_QKV, 3 * H)
    scale = 1.0 / math.sqrt(HD)
    q = qkv[:, :H] * scale               # (M, H) = [q_head0 | q_head1]
    k = qkv[:, H:2 * H]                  # (M, H) = [k_head0 | k_head1]
    v = qkv[:, 2 * H:]                   # (M, H) = [v_head0 | v_head1]

    # ---- fused two-head attention ----
    # Block-diagonal Q along a doubled row axis: rows [0,M) carry head-0 lanes,
    # rows [M,2M) carry head-1 lanes, so one matmul against K^T yields both
    # heads' score blocks without 32-lane sub-vreg slices.
    row2 = lax.broadcasted_iota(jnp.int32, (2 * M, H), 0)
    lane2 = lax.broadcasted_iota(jnp.int32, (2 * M, H), 1)
    head_sel = (row2 >= M) == (lane2 >= HD)
    q_bd = jnp.where(head_sel, jnp.concatenate([q, q], axis=0), 0.0)   # (2M, H)

    s = lax.dot_general(q_bd.astype(MATMUL_DTYPE), k.astype(MATMUL_DTYPE),
                        (((1,), (1,)), ((), ())),
                        preferred_element_type=jnp.float32)            # (2M, M)
    s = s + bias_ref[...].astype(jnp.float32)     # block-diag batches, no-self
    s = s - jnp.max(s, axis=-1, keepdims=True)
    e = jnp.exp(s)
    p = e * pl.reciprocal(jnp.sum(e, axis=-1, keepdims=True), approx=True)

    # Both heads' P@V in one (2M,M)x(M,H) matmul; lane-select splits the heads.
    pv = jnp.dot(p.astype(MATMUL_DTYPE), v.astype(MATMUL_DTYPE),
                 preferred_element_type=jnp.float32)                   # (2M, H)
    lane1 = lax.broadcasted_iota(jnp.int32, (M, H), 1)
    attn = jnp.where(lane1 < HD, pv[:M, :], pv[M:, :])                 # (M, H)
    attn = mm(attn, w_o_ref) + vrow(R_B_O, H)

    xr = self_h + attn
    x2 = _layernorm(xr, vrow(R_LN2G, H), vrow(R_LN2B, H))
    mlp = mm(jax.nn.relu(mm(x2, w_m1_ref) + vrow(R_B_M1, 4 * H)), w_m2_ref) \
        + vrow(R_B_M2, H)
    y = xr + mlp                                                       # actor self embeds

    # ---- ContinuousActions decider: ReLU -> Linear -> ReLU -> Linear -> Tanh ----
    a = jax.nn.relu(y)
    a = jax.nn.relu(mm(a, w_d1_ref) + vrow(R_B_D1, H))
    a = jnp.tanh(mm(a, w_d2_ref) + vrow(R_B_D2, OUT_PAD))              # lane-dense store
    act_ref[...] = a.astype(act_ref.dtype)


# --------------------------------------------------------------------------
# Parameter construction & packing
# --------------------------------------------------------------------------
def make_params(key):
    ks = iter(jax.random.split(key, 40))

    def lin(fi, fo):
        k1, k2 = jax.random.split(next(ks))
        lim = 1.0 / math.sqrt(fi)
        w = jax.random.uniform(k1, (fi, fo), jnp.float32, -lim, lim)
        b = jax.random.uniform(k2, (1, fo), jnp.float32, -lim, lim)
        return w, b

    p = {
        'self_pos': lin(P, H), 'self_feat': lin(F, H),
        'node_pos': lin(P, H), 'node_feat': lin(F, H),
        'self_embed': lin(H, H), 'node_embed': lin(H, H),
        'ln0': (jnp.ones((1, H), jnp.float32), jnp.zeros((1, H), jnp.float32)),
        'ln1': (jnp.ones((1, H), jnp.float32), jnp.zeros((1, H), jnp.float32)),
        'ln2': (jnp.ones((1, H), jnp.float32), jnp.zeros((1, H), jnp.float32)),
        'q': lin(H, H), 'k': lin(H, H), 'v': lin(H, H), 'o': lin(H, H),
        'mlp1': lin(H, 4 * H), 'mlp2': lin(4 * H, H),
        'dec1': lin(H, H), 'dec2': lin(H, OUT),
        'log_std': jnp.array(0.0, jnp.float32),
    }
    return p


def pack_params(p):
    """Pack per-layer weights into a few fused, lane-dense slabs.
    Called ONCE per parameter set (hoisted out of the hot path)."""
    f32 = jnp.float32
    w_sp, b_sp = p['self_pos'];   w_sf, b_sf = p['self_feat']
    w_np_, b_np_ = p['node_pos']; w_nf, b_nf = p['node_feat']
    w_se, b_se = p['self_embed']; w_ne, b_ne = p['node_embed']
    w_q, b_q = p['q']; w_k, b_k = p['k']; w_v, b_v = p['v']; w_o, b_o = p['o']
    w_m1, b_m1 = p['mlp1']; w_m2, b_m2 = p['mlp2']
    w_d1, b_d1 = p['dec1']; w_d2, b_d2 = p['dec2']

    # x @ w_emb == [self_pos+self_feat | node_pos+node_feat]   (D, 2H)
    w_emb = jnp.concatenate(
        [jnp.concatenate([w_sp, w_sf], axis=0),
         jnp.concatenate([w_np_, w_nf], axis=0)], axis=1)
    zHH = jnp.zeros((H, H), f32)
    # [relu_self | relu_node] @ w_sn == [self_embed | node_embed]   (2H, 2H)
    w_sn = jnp.block([[w_se, zHH], [zHH, w_ne]])
    # [x1 | kv1] @ w_qkv == [q | k | v]   (2H, 3H)
    w_qkv = jnp.block([[w_q, zHH, zHH], [zHH, w_k, w_v]])
    # zero-pad the decider output layer to 128 lanes (lane-dense store; tanh(0)=0)
    w_d2p = jnp.zeros((H, OUT_PAD), f32).at[:, :OUT].set(w_d2)

    # single (16, 4H) f32 slab for all bias / LayerNorm vectors (one DMA).
    vec = jnp.zeros((16, 4 * H), f32)
    vec = vec.at[R_B_EMB, :2 * H].set(jnp.concatenate([b_sp + b_sf, b_np_ + b_nf], 1)[0])
    vec = vec.at[R_B_SN, :2 * H].set(jnp.concatenate([b_se, b_ne], 1)[0])
    vec = vec.at[R_B_QKV, :3 * H].set(jnp.concatenate([b_q, b_k, b_v], 1)[0])
    vec = vec.at[R_B_O, :H].set(b_o[0])
    vec = vec.at[R_B_M1, :4 * H].set(b_m1[0])
    vec = vec.at[R_B_M2, :H].set(b_m2[0])
    vec = vec.at[R_B_D1, :H].set(b_d1[0])
    vec = vec.at[R_B_D2, :OUT].set(b_d2[0])
    vec = vec.at[R_LN0G, :H].set(p['ln0'][0][0]); vec = vec.at[R_LN0B, :H].set(p['ln0'][1][0])
    vec = vec.at[R_LN1G, :H].set(p['ln1'][0][0]); vec = vec.at[R_LN1B, :H].set(p['ln1'][1][0])
    vec = vec.at[R_LN2G, :H].set(p['ln2'][0][0]); vec = vec.at[R_LN2B, :H].set(p['ln2'][1][0])

    wd = MATMUL_DTYPE
    weights = tuple(a.astype(wd) for a in
                    (w_emb, w_sn, w_qkv, w_o, w_m1, w_m2, w_d1, w_d2p))
    return weights + (vec,)


# --------------------------------------------------------------------------
# Attention bias (host-built, cached per tile plan)
# --------------------------------------------------------------------------
_BIAS_CACHE = {}


def get_attn_bias(BT, N, Np):
    """(2M, M) additive attention bias for BT batches folded into one M=BT*Np
    row tile, stacked twice along rows for the two fused heads.  Rows may attend
    only within their own batch block, never to themselves (eye(N) mask), and
    never to zero-padded entity columns (col index >= N).
    NOTE: N == 1 (fully-masked row) diverges from torch's -inf/strip path."""
    key = (BT, N, Np)
    if key not in _BIAS_CACHE:
        M = BT * Np
        r = np.arange(M)
        batch = r // Np
        col = r % Np
        same_batch = batch[:, None] == batch[None, :]
        allowed = same_batch & (col[None, :] < N) & (r[:, None] != r[None, :])
        b = np.where(allowed, 0.0, -1e30).astype(np.float32)
        b2 = np.concatenate([b, b], axis=0)             # stacked for 2 fused heads
        # bf16 halves the biggest constant slab; the add happens in f32 in-kernel.
        _BIAS_CACHE[key] = jnp.asarray(b2, dtype=jnp.bfloat16)
    return _BIAS_CACHE[key]


# --------------------------------------------------------------------------
# Tiling plan & wrapper
# --------------------------------------------------------------------------
def _default_tile_rows():
    # 128 suits v5e's 128-wide MXU / weaker VPU-EUP; 256 suits v6e/v7x.
    # Treated as a swept parameter — do not grow past 256 (masked attention
    # work scales as M^2 while useful rows scale as M).
    try:
        kind = jax.devices()[0].device_kind.lower()
    except Exception:
        return 128
    return 256 if ("v6" in kind or "v7" in kind) else 128


def _plan_tiling(B, N, tile_rows):
    """Pick (BT, Np): whole batches per row tile and (possibly padded) entity
    count so M = BT*Np is a multiple of 8 (sublane rule) and the grid has >= 2
    parallel steps whenever B >= 2 (v7x megacore)."""
    step = 8 // math.gcd(N, 8)                 # BT granularity so BT*N % 8 == 0
    Np = N
    cap = min(max(1, tile_rows // N), B)
    if B >= 2:
        cap = min(cap, _cdiv(B, 2))
    if cap < step:
        # Awkward N: pad entities to a multiple of 8 so any whole-batch tile is
        # sublane aligned (padded columns are masked in the bias).
        Np = _cdiv(N, 8) * 8
        step = 1
        cap = min(max(1, tile_rows // Np), B)
        if B >= 2:
            cap = min(cap, _cdiv(B, 2))
    BT = (cap // step) * step
    n_steps = _cdiv(B, BT)
    BT = _cdiv(_cdiv(B, n_steps), step) * step   # balance: minimize padded batches
    return BT, Np


def _cost_estimate(n_steps, M, bytes_accessed):
    mm_flops = 2 * M * (D * 2 * H + (2 * H) * (2 * H) + (2 * H) * (3 * H)
                        + H * H + H * 4 * H + 4 * H * H + H * H + H * OUT_PAD)
    attn_flops = 2 * (2 * M) * H * M + 2 * (2 * M) * M * H      # scores + P@V
    transcend = 2 * M * M + M * OUT_PAD + 5 * M                 # exp, tanh, rsqrt, rcp
    return pl.CostEstimate(flops=int(n_steps * (mm_flops + attn_flops)),
                           transcendentals=int(n_steps * transcend),
                           bytes_accessed=int(bytes_accessed))


@functools.partial(jax.jit, static_argnames=("BT", "Np"))
def _embed_decide(x, bias, slabs, *, BT, Np):
    B, N, Dv = x.shape
    Bp = _cdiv(B, BT) * BT
    if Bp != B or Np != N:                       # zero-pad (results discarded)
        x = jnp.pad(x, ((0, Bp - B), (0, Np - N), (0, 0)))
    x2d = x.reshape(Bp * Np, Dv)

    M = BT * Np
    n_steps = Bp // BT
    const = lambda b: (0, 0)
    in_specs = [pl.BlockSpec((M, Dv), lambda b: (b, 0)),
                pl.BlockSpec(bias.shape, const)]
    in_specs += [pl.BlockSpec(s.shape, const) for s in slabs]
    # TODO(synk): constant-index slabs could be single-buffered (pl.Buffered(1));
    # skipped here — the ~1 MiB of double-buffer VMEM is negligible for this model.

    bytes_accessed = (x2d.size * np.dtype(x2d.dtype).itemsize
                      + Bp * Np * OUT_PAD * 4
                      + bias.size * np.dtype(bias.dtype).itemsize
                      + sum(s.size * np.dtype(s.dtype).itemsize for s in slabs))

    out2d = pl.pallas_call(
        entity_attention_kernel,
        out_shape=jax.ShapeDtypeStruct((Bp * Np, OUT_PAD), jnp.float32),
        grid=(n_steps,),
        in_specs=in_specs,
        out_specs=pl.BlockSpec((M, OUT_PAD), lambda b: (b, 0)),
        compiler_params=pltpu.CompilerParams(dimension_semantics=("parallel",)),
        cost_estimate=_cost_estimate(n_steps, M, bytes_accessed),
    )(x2d, bias, *slabs)

    return out2d.reshape(Bp, Np, OUT_PAD)[:B, :N, :OUT]


def actor_embed_and_decide(x, packed, *, tile_rows=None):
    """Hot path (embeddings + residual attention block + actor decider MLP) as
    one Pallas kernel.  `packed` = pack_params(params), built once.
    Returns tanh action means of shape (B, N, OUT)."""
    B, N, Dv = x.shape
    assert Dv == D
    if tile_rows is None:
        tile_rows = _default_tile_rows()
    BT, Np = _plan_tiling(B, N, tile_rows)
    bias = get_attn_bias(BT, N, Np)              # cached host build
    return _embed_decide(x, bias, packed, BT=BT, Np=Np)


def forward(self_entities, params, packed, sample_key):
    """Full default forward (actor path, training mode): (action, action_log)."""
    B, N, _ = self_entities.shape
    loc = actor_embed_and_decide(self_entities, packed).reshape(B * N, OUT)
    scale = jnp.exp(params['log_std'])
    # TODO(synk): torch RNG Normal sampling has no in-kernel equivalent; plain JAX.
    eps = jax.random.normal(sample_key, loc.shape, jnp.float32)
    action = loc + scale * eps
    log_prob = jnp.sum(
        -((action - loc) ** 2) / (2.0 * scale ** 2)
        - jnp.log(scale) - 0.5 * math.log(2.0 * math.pi),
        axis=-1,
    )
    return action, log_prob


# --------------------------------------------------------------------------
# Pure-JAX f32 reference of the kernel math (correctness check)
# --------------------------------------------------------------------------
def _ref_single(x, p):
    pos, feat = x[:, :P], x[:, P:]
    sp = pos @ p['self_pos'][0] + p['self_pos'][1]
    sf = feat @ p['self_feat'][0] + p['self_feat'][1]
    npos = pos @ p['node_pos'][0] + p['node_pos'][1]
    nf = feat @ p['node_feat'][0] + p['node_feat'][1]
    self_h = jax.nn.relu(jax.nn.relu(sp + sf) @ p['self_embed'][0] + p['self_embed'][1])
    node_h = jax.nn.relu(jax.nn.relu(npos + nf) @ p['node_embed'][0] + p['node_embed'][1])
    x1 = _layernorm(self_h, p['ln0'][0], p['ln0'][1])
    kv1 = _layernorm(node_h, p['ln1'][0], p['ln1'][1])
    q = x1 @ p['q'][0] + p['q'][1]
    k = kv1 @ p['k'][0] + p['k'][1]
    v = kv1 @ p['v'][0] + p['v'][1]
    n = q.shape[0]
    diag = jnp.eye(n, dtype=bool)
    outs = []
    for h in range(HEADS):
        qh = q[:, h * HD:(h + 1) * HD] / math.sqrt(HD)
        kh = k[:, h * HD:(h + 1) * HD]
        vh = v[:, h * HD:(h + 1) * HD]
        s = jnp.where(diag, -1e30, qh @ kh.T)
        outs.append(jax.nn.softmax(s, axis=-1) @ vh)
    attn = jnp.concatenate(outs, -1) @ p['o'][0] + p['o'][1]
    xr = self_h + attn
    x1 = _layernorm(xr, p['ln2'][0], p['ln2'][1])
    y = xr + (jax.nn.relu(x1 @ p['mlp1'][0] + p['mlp1'][1]) @ p['mlp2'][0] + p['mlp2'][1])
    a = jax.nn.relu(y)
    a = jax.nn.relu(a @ p['dec1'][0] + p['dec1'][1])
    return jnp.tanh(a @ p['dec2'][0] + p['dec2'][1])


if __name__ == "__main__":
    key = jax.random.PRNGKey(0)
    k_param, k1, k2, k3, k_sample = jax.random.split(key, 5)

    params = make_params(k_param)
    packed = pack_params(params)     # hoisted: packed once, reused every call

    # bf16 MXU operands + approx EUP softmax reciprocal vs f32 reference:
    # structural/packing/masking bugs produce O(0.1-1) errors, so this still catches them.
    TOL = 6e-2

    # Small case (B=2, N=8): two 8-row tiles (>=2 parallel steps for v7x megacore).
    B, N = 2, 8
    x_small = jax.random.normal(k1, (B, N, D), jnp.float32)
    got = jax.block_until_ready(actor_embed_and_decide(x_small, packed))
    ref = jax.vmap(lambda xx: _ref_single(xx, params))(x_small)
    assert got.shape == (B, N, OUT)
    assert jnp.allclose(got, ref, atol=TOL, rtol=TOL), float(jnp.max(jnp.abs(got - ref)))

    # Larger batch: batch folding into big row tiles, zero padding, multi-step grid.
    B2 = 37
    x_big = jax.random.normal(k2, (B2, N, D), jnp.float32)
    got2 = jax.block_until_ready(actor_embed_and_decide(x_big, packed))
    ref2 = jax.vmap(lambda xx: _ref_single(xx, params))(x_big)
    assert jnp.allclose(got2, ref2, atol=TOL, rtol=TOL), float(jnp.max(jnp.abs(got2 - ref2)))

    # Odd N (doesn't divide the 8-row sublane granule): exercises the N-padding
    # path and the masked padded-entity columns.
    B3, N3 = 5, 10
    x_odd = jax.random.normal(k3, (B3, N3, D), jnp.float32)
    got3 = jax.block_until_ready(actor_embed_and_decide(x_odd, packed))
    ref3 = jax.vmap(lambda xx: _ref_single(xx, params))(x_odd)
    assert got3.shape == (B3, N3, OUT)
    assert jnp.allclose(got3, ref3, atol=TOL, rtol=TOL), float(jnp.max(jnp.abs(got3 - ref3)))

    # Full forward (actor path): (action, action_log) like the PyTorch module.
    action, action_log = forward(x_small, params, packed, k_sample)
    jax.block_until_ready((action, action_log))
    assert action.shape == (B * N, OUT) and action_log.shape == (B * N,)

    print("KERNEL_OK")
</pallas_src>

<mosaic_0001>
module attributes {stable_mosaic.version = 11 : i64} {
  func.func @entity_attention_kernel(%arg0: i32, %arg1: memref<8x16xf32, #tpu.memory_space<vmem>>, %arg2: memref<16x8xbf16, #tpu.memory_space<vmem>>, %arg3: memref<16x128xbf16, #tpu.memory_space<vmem>>, %arg4: memref<128x128xbf16, #tpu.memory_space<vmem>>, %arg5: memref<128x192xbf16, #tpu.memory_space<vmem>>, %arg6: memref<64x64xbf16, #tpu.memory_space<vmem>>, %arg7: memref<64x256xbf16, #tpu.memory_space<vmem>>, %arg8: memref<256x64xbf16, #tpu.memory_space<vmem>>, %arg9: memref<64x64xbf16, #tpu.memory_space<vmem>>, %arg10: memref<64x128xbf16, #tpu.memory_space<vmem>>, %arg11: memref<16x256xf32, #tpu.memory_space<vmem>>, %arg12: memref<8x128xf32, #tpu.memory_space<vmem>>) attributes {dimension_semantics = [#tpu.dimension_semantics<parallel>], iteration_bounds = array<i64: 2>, scalar_prefetch = 0 : i64, scratch_operands = 0 : i64, tpu.core_type = #tpu.core_type<tc>, window_params = [{transform_indices = @transform_0, window_bounds = array<i64: 8, 16>}, {pipeline_mode = #tpu.pipeline_mode<synchronous>, transform_indices = @transform_1, window_bounds = array<i64: 16, 8>}, {pipeline_mode = #tpu.pipeline_mode<synchronous>, transform_indices = @transform_2, window_bounds = array<i64: 16, 128>}, {pipeline_mode = #tpu.pipeline_mode<synchronous>, transform_indices = @transform_3, window_bounds = array<i64: 128, 128>}, {pipeline_mode = #tpu.pipeline_mode<synchronous>, transform_indices = @transform_4, window_bounds = array<i64: 128, 192>}, {pipeline_mode = #tpu.pipeline_mode<synchronous>, transform_indices = @transform_5, window_bounds = array<i64: 64, 64>}, {pipeline_mode = #tpu.pipeline_mode<synchronous>, transform_indices = @transform_6, window_bounds = array<i64: 64, 256>}, {pipeline_mode = #tpu.pipeline_mode<synchronous>, transform_indices = @transform_7, window_bounds = array<i64: 256, 64>}, {pipeline_mode = #tpu.pipeline_mode<synchronous>, transform_indices = @transform_8, window_bounds = array<i64: 64, 64>}, {pipeline_mode = #tpu.pipeline_mode<synchronous>, transform_indices = @transform_9, window_bounds = array<i64: 64, 128>}, {pipeline_mode = #tpu.pipeline_mode<synchronous>, transform_indices = @transform_10, window_bounds = array<i64: 16, 256>}, {transform_indices = @transform_11, window_bounds = array<i64: 8, 128>}]} {
    %c0 = arith.constant 0 : index
    %c0_0 = arith.constant 0 : index
    %0 = vector.load %arg1[%c0, %c0_0] : memref<8x16xf32, #tpu.memory_space<vmem>>, vector<8x16xf32>
    %c0_1 = arith.constant 0 : index
    %c0_2 = arith.constant 0 : index
    %1 = vector.load %arg11[%c0_1, %c0_2] : memref<16x256xf32, #tpu.memory_space<vmem>>, vector<16x256xf32>
    %2 = arith.truncf %0 : vector<8x16xf32> to vector<8x16xbf16>
    %c0_3 = arith.constant 0 : index
    %c0_4 = arith.constant 0 : index
    %3 = vector.load %arg3[%c0_3, %c0_4] : memref<16x128xbf16, #tpu.memory_space<vmem>>, vector<16x128xbf16>
    %cst = arith.constant dense<0.000000e+00> : vector<8x128xf32>
    %4 = tpu.matmul %2, %3, %cst {dimension_numbers = #tpu.dot_dimension_numbers<[1], [0], [0], [1], [0, 0, 1, 1], [], []>} : vector<8x16xbf16>, vector<16x128xbf16>, vector<8x128xf32> -> vector<8x128xf32>
    %5 = vector.extract_strided_slice %1 {offsets = [0, 0], sizes = [1, 128], strides = [1, 1]} : vector<16x256xf32> to vector<1x128xf32>
    %6 = vector.broadcast %5 : vector<1x128xf32> to vector<8x128xf32>
    %7 = arith.addf %4, %6 : vector<8x128xf32>
    %cst_5 = arith.constant 0.000000e+00 : f32
    %8 = vector.broadcast %cst_5 : f32 to vector<8x128xf32>
    %9 = arith.maximumf %7, %8 : vector<8x128xf32>
    %10 = arith.truncf %9 : vector<8x128xf32> to vector<8x128xbf16>
    %c0_6 = arith.constant 0 : index
    %c0_7 = arith.constant 0 : index
    %11 = vector.load %arg4[%c0_6, %c0_7] : memref<128x128xbf16, #tpu.memory_space<vmem>>, vector<128x128xbf16>
    %cst_8 = arith.constant dense<0.000000e+00> : vector<8x128xf32>
    %12 = tpu.matmul %10, %11, %cst_8 {dimension_numbers = #tpu.dot_dimension_numbers<[1], [0], [0], [1], [0, 0, 1, 1], [], []>} : vector<8x128xbf16>, vector<128x128xbf16>, vector<8x128xf32> -> vector<8x128xf32>
    %13 = vector.extract_strided_slice %1 {offsets = [1, 0], sizes = [1, 128], strides = [1, 1]} : vector<16x256xf32> to vector<1x128xf32>
    %14 = vector.broadcast %13 : vector<1x128xf32> to vector<8x128xf32>
    %15 = arith.addf %12, %14 : vector<8x128xf32>
    %cst_9 = arith.constant 0.000000e+00 : f32
    %16 = vector.broadcast %cst_9 : f32 to vector<8x128xf32>
    %17 = arith.maximumf %15, %16 : vector<8x128xf32>
    %18 = vector.extract_strided_slice %17 {offsets = [0, 0], sizes = [8, 64], strides = [1, 1]} : vector<8x128xf32> to vector<8x64xf32>
    %19 = vector.extract_strided_slice %17 {offsets = [0, 64], sizes = [8, 64], strides = [1, 1]} : vector<8x128xf32> to vector<8x64xf32>
    %20 = vector.extract_strided_slice %1 {offsets = [8, 0], sizes = [1, 64], strides = [1, 1]} : vector<16x256xf32> to vector<1x64xf32>
    %21 = vector.extract_strided_slice %1 {offsets = [9, 0], sizes = [1, 64], strides = [1, 1]} : vector<16x256xf32> to vector<1x64xf32>
    %cst_10 = arith.constant dense<0.000000e+00> : vector<8xf32>
    %22 = vector.multi_reduction <add>, %18, %cst_10 [1] : vector<8x64xf32> to vector<8xf32>
    %23 = vector.shape_cast %22 : vector<8xf32> to vector<8x1xf32>
    %cst_11 = arith.constant 6.400000e+01 : f32
    %24 = vector.broadcast %cst_11 : f32 to vector<8x1xf32>
    %25 = arith.divf %23, %24 : vector<8x1xf32>
    %26 = vector.broadcast %25 : vector<8x1xf32> to vector<8x64xf32>
    %27 = arith.subf %18, %26 : vector<8x64xf32>
    %28 = arith.mulf %27, %27 : vector<8x64xf32>
    %cst_12 = arith.constant dense<0.000000e+00> : vector<8xf32>
    %29 = vector.multi_reduction <add>, %28, %cst_12 [1] : vector<8x64xf32> to vector<8xf32>
    %30 = vector.shape_cast %29 : vector<8xf32> to vector<8x1xf32>
    %cst_13 = arith.constant 6.400000e+01 : f32
    %31 = vector.broadcast %cst_13 : f32 to vector<8x1xf32>
    %32 = arith.divf %30, %31 : vector<8x1xf32>
    %33 = vector.broadcast %25 : vector<8x1xf32> to vector<8x64xf32>
    %34 = arith.subf %18, %33 : vector<8x64xf32>
    %cst_14 = arith.constant 9.99999974E-6 : f32
    %35 = vector.broadcast %cst_14 : f32 to vector<8x1xf32>
    %36 = arith.addf %32, %35 : vector<8x1xf32>
    %37 = math.rsqrt %36 : vector<8x1xf32>
    %38 = vector.broadcast %37 : vector<8x1xf32> to vector<8x64xf32>
    %39 = arith.mulf %34, %38 : vector<8x64xf32>
    %40 = vector.broadcast %20 : vector<1x64xf32> to vector<8x64xf32>
    %41 = arith.mulf %39, %40 : vector<8x64xf32>
    %42 = vector.broadcast %21 : vector<1x64xf32> to vector<8x64xf32>
    %43 = arith.addf %41, %42 : vector<8x64xf32>
    %44 = vector.extract_strided_slice %1 {offsets = [10, 0], sizes = [1, 64], strides = [1, 1]} : vector<16x256xf32> to vector<1x64xf32>
    %45 = vector.extract_strided_slice %1 {offsets = [11, 0], sizes = [1, 64], strides = [1, 1]} : vector<16x256xf32> to vector<1x64xf32>
    %cst_15 = arith.constant dense<0.000000e+00> : vector<8xf32>
    %46 = vector.multi_reduction <add>, %19, %cst_15 [1] : vector<8x64xf32> to vector<8xf32>
    %47 = vector.shape_cast %46 : vector<8xf32> to vector<8x1xf32>
    %cst_16 = arith.constant 6.400000e+01 : f32
    %48 = vector.broadcast %cst_16 : f32 to vector<8x1xf32>
    %49 = arith.divf %47, %48 : vector<8x1xf32>
    %50 = vector.broadcast %49 : vector<8x1xf32> to vector<8x64xf32>
    %51 = arith.subf %19, %50 : vector<8x64xf32>
    %52 = arith.mulf %51, %51 : vector<8x64xf32>
    %cst_17 = arith.constant dense<0.000000e+00> : vector<8xf32>
    %53 = vector.multi_reduction <add>, %52, %cst_17 [1] : vector<8x64xf32> to vector<8xf32>
    %54 = vector.shape_cast %53 : vector<8xf32> to vector<8x1xf32>
    %cst_18 = arith.constant 6.400000e+01 : f32
    %55 = vector.broadcast %cst_18 : f32 to vector<8x1xf32>
    %56 = arith.divf %54, %55 : vector<8x1xf32>
    %57 = vector.broadcast %49 : vector<8x1xf32> to vector<8x64xf32>
    %58 = arith.subf %19, %57 : vector<8x64xf32>
    %cst_19 = arith.constant 9.99999974E-6 : f32
    %59 = vector.broadcast %cst_19 : f32 to vector<8x1xf32>
    %60 = arith.addf %56, %59 : vector<8x1xf32>
    %61 = math.rsqrt %60 : vector<8x1xf32>
    %62 = vector.broadcast %61 : vector<8x1xf32> to vector<8x64xf32>
    %63 = arith.mulf %58, %62 : vector<8x64xf32>
    %64 = vector.broadcast %44 : vector<1x64xf32> to vector<8x64xf32>
    %65 = arith.mulf %63, %64 : vector<8x64xf32>
    %66 = vector.broadcast %45 : vector<1x64xf32> to vector<8x64xf32>
    %67 = arith.addf %65, %66 : vector<8x64xf32>
    %68 = tpu.concatenate %43, %67 in 1 : vector<8x64xf32>, vector<8x64xf32> -> vector<8x128xf32>
    %69 = arith.truncf %68 : vector<8x128xf32> to vector<8x128xbf16>
    %c0_20 = arith.constant 0 : index
    %c0_21 = arith.constant 0 : index
    %70 = vector.load %arg5[%c0_20, %c0_21] : memref<128x192xbf16, #tpu.memory_space<vmem>>, vector<128x192xbf16>
    %cst_22 = arith.constant dense<0.000000e+00> : vector<8x192xf32>
    %71 = tpu.matmul %69, %70, %cst_22 {dimension_numbers = #tpu.dot_dimension_numbers<[1], [0], [0], [1], [0, 0, 1, 1], [], []>} : vector<8x128xbf16>, vector<128x192xbf16>, vector<8x192xf32> -> vector<8x192xf32>
    %72 = vector.extract_strided_slice %1 {offsets = [2, 0], sizes = [1, 192], strides = [1, 1]} : vector<16x256xf32> to vector<1x192xf32>
    %73 = vector.broadcast %72 : vector<1x192xf32> to vector<8x192xf32>
    %74 = arith.addf %71, %73 : vector<8x192xf32>
    %75 = vector.extract_strided_slice %74 {offsets = [0, 0], sizes = [8, 64], strides = [1, 1]} : vector<8x192xf32> to vector<8x64xf32>
    %cst_23 = arith.constant 0.176776692 : f32
    %76 = vector.broadcast %cst_23 : f32 to vector<8x64xf32>
    %77 = arith.mulf %75, %76 : vector<8x64xf32>
    %78 = vector.extract_strided_slice %74 {offsets = [0, 64], sizes = [8, 64], strides = [1, 1]} : vector<8x192xf32> to vector<8x64xf32>
    %79 = vector.extract_strided_slice %74 {offsets = [0, 128], sizes = [8, 64], strides = [1, 1]} : vector<8x192xf32> to vector<8x64xf32>
    %80 = tpu.iota {dimensions = array<i32: 0>} : vector<16x64xi32>
    %81 = tpu.iota {dimensions = array<i32: 1>} : vector<16x64xi32>
    %c8_i32 = arith.constant 8 : i32
    %82 = vector.broadcast %c8_i32 : i32 to vector<16x64xi32>
    %83 = arith.cmpi sge, %80, %82 : vector<16x64xi32>
    %c32_i32 = arith.constant 32 : i32
    %84 = vector.broadcast %c32_i32 : i32 to vector<16x64xi32>
    %85 = arith.cmpi sge, %81, %84 : vector<16x64xi32>
    %86 = arith.xori %83, %85 : vector<16x64xi1>
    %cst_24 = arith.constant dense<true> : vector<16x64xi1>
    %87 = arith.xori %86, %cst_24 : vector<16x64xi1>
    %88 = tpu.concatenate %77, %77 in 0 : vector<8x64xf32>, vector<8x64xf32> -> vector<16x64xf32>
    %cst_25 = arith.constant 0.000000e+00 : f32
    %89 = vector.broadcast %cst_25 : f32 to vector<16x64xf32>
    %90 = arith.select %87, %88, %89 : vector<16x64xi1>, vector<16x64xf32>
    %91 = arith.truncf %90 : vector<16x64xf32> to vector<16x64xbf16>
    %92 = arith.truncf %78 : vector<8x64xf32> to vector<8x64xbf16>
    %cst_26 = arith.constant dense<0.000000e+00> : vector<16x8xf32>
    %93 = tpu.matmul %91, %92, %cst_26 {dimension_numbers = #tpu.dot_dimension_numbers<[1], [1], [0], [0], [0, 0, 1, 0], [], []>} : vector<16x64xbf16>, vector<8x64xbf16>, vector<16x8xf32> -> vector<16x8xf32>
    %c0_27 = arith.constant 0 : index
    %c0_28 = arith.constant 0 : index
    %94 = vector.load %arg2[%c0_27, %c0_28] : memref<16x8xbf16, #tpu.memory_space<vmem>>, vector<16x8xbf16>
    %95 = arith.extf %94 : vector<16x8xbf16> to vector<16x8xf32>
    %96 = arith.addf %93, %95 : vector<16x8xf32>
    %cst_29 = arith.constant dense<0xFF800000> : vector<16xf32>
    %97 = vector.multi_reduction <maximumf>, %96, %cst_29 [1] : vector<16x8xf32> to vector<16xf32>
    %98 = vector.shape_cast %97 : vector<16xf32> to vector<16x1xf32>
    %99 = vector.broadcast %98 : vector<16x1xf32> to vector<16x8xf32>
    %100 = arith.subf %96, %99 : vector<16x8xf32>
    %101 = math.exp %100 : vector<16x8xf32>
    %cst_30 = arith.constant dense<0.000000e+00> : vector<16xf32>
    %102 = vector.multi_reduction <add>, %101, %cst_30 [1] : vector<16x8xf32> to vector<16xf32>
    %103 = vector.shape_cast %102 : vector<16xf32> to vector<16x1xf32>
    %104 = tpu.reciprocal %103 {approx = true} : vector<16x1xf32> -> vector<16x1xf32>
    %105 = vector.broadcast %104 : vector<16x1xf32> to vector<16x8xf32>
    %106 = arith.mulf %101, %105 : vector<16x8xf32>
    %107 = arith.truncf %106 : vector<16x8xf32> to vector<16x8xbf16>
    %108 = arith.truncf %79 : vector<8x64xf32> to vector<8x64xbf16>
    %cst_31 = arith.constant dense<0.000000e+00> : vector<16x64xf32>
    %109 = tpu.matmul %107, %108, %cst_31 {dimension_numbers = #tpu.dot_dimension_numbers<[1], [0], [0], [1], [0, 0, 1, 1], [], []>} : vector<16x8xbf16>, vector<8x64xbf16>, vector<16x64xf32> -> vector<16x64xf32>
    %110 = tpu.iota {dimensions = array<i32: 1>} : vector<8x64xi32>
    %c32_i32_32 = arith.constant 32 : i32
    %111 = vector.broadcast %c32_i32_32 : i32 to vector<8x64xi32>
    %112 = arith.cmpi slt, %110, %111 : vector<8x64xi32>
    %113 = vector.extract_strided_slice %109 {offsets = [0, 0], sizes = [8, 64], strides = [1, 1]} : vector<16x64xf32> to vector<8x64xf32>
    %114 = vector.extract_strided_slice %109 {offsets = [8, 0], sizes = [8, 64], strides = [1, 1]} : vector<16x64xf32> to vector<8x64xf32>
    %115 = arith.select %112, %113, %114 : vector<8x64xi1>, vector<8x64xf32>
    %116 = arith.truncf %115 : vector<8x64xf32> to vector<8x64xbf16>
    %c0_33 = arith.constant 0 : index
    %c0_34 = arith.constant 0 : index
    %117 = vector.load %arg6[%c0_33, %c0_34] : memref<64x64xbf16, #tpu.memory_space<vmem>>, vector<64x64xbf16>
    %cst_35 = arith.constant dense<0.000000e+00> : vector<8x64xf32>
    %118 = tpu.matmul %116, %117, %cst_35 {dimension_numbers = #tpu.dot_dimension_numbers<[1], [0], [0], [1], [0, 0, 1, 1], [], []>} : vector<8x64xbf16>, vector<64x64xbf16>, vector<8x64xf32> -> vector<8x64xf32>
    %119 = vector.extract_strided_slice %1 {offsets = [3, 0], sizes = [1, 64], strides = [1, 1]} : vector<16x256xf32> to vector<1x64xf32>
    %120 = vector.broadcast %119 : vector<1x64xf32> to vector<8x64xf32>
    %121 = arith.addf %118, %120 : vector<8x64xf32>
    %122 = arith.addf %18, %121 : vector<8x64xf32>
    %123 = vector.extract_strided_slice %1 {offsets = [12, 0], sizes = [1, 64], strides = [1, 1]} : vector<16x256xf32> to vector<1x64xf32>
    %124 = vector.extract_strided_slice %1 {offsets = [13, 0], sizes = [1, 64], strides = [1, 1]} : vector<16x256xf32> to vector<1x64xf32>
    %cst_36 = arith.constant dense<0.000000e+00> : vector<8xf32>
    %125 = vector.multi_reduction <add>, %122, %cst_36 [1] : vector<8x64xf32> to vector<8xf32>
    %126 = vector.shape_cast %125 : vector<8xf32> to vector<8x1xf32>
    %cst_37 = arith.constant 6.400000e+01 : f32
    %127 = vector.broadcast %cst_37 : f32 to vector<8x1xf32>
    %128 = arith.divf %126, %127 : vector<8x1xf32>
    %129 = vector.broadcast %128 : vector<8x1xf32> to vector<8x64xf32>
    %130 = arith.subf %122, %129 : vector<8x64xf32>
    %131 = arith.mulf %130, %130 : vector<8x64xf32>
    %cst_38 = arith.constant dense<0.000000e+00> : vector<8xf32>
    %132 = vector.multi_reduction <add>, %131, %cst_38 [1] : vector<8x64xf32> to vector<8xf32>
    %133 = vector.shape_cast %132 : vector<8xf32> to vector<8x1xf32>
    %cst_39 = arith.constant 6.400000e+01 : f32
    %134 = vector.broadcast %cst_39 : f32 to vector<8x1xf32>
    %135 = arith.divf %133, %134 : vector<8x1xf32>
    %136 = vector.broadcast %128 : vector<8x1xf32> to vector<8x64xf32>
    %137 = arith.subf %122, %136 : vector<8x64xf32>
    %cst_40 = arith.constant 9.99999974E-6 : f32
    %138 = vector.broadcast %cst_40 : f32 to vector<8x1xf32>
    %139 = arith.addf %135, %138 : vector<8x1xf32>
    %140 = math.rsqrt %139 : vector<8x1xf32>
    %141 = vector.broadcast %140 : vector<8x1xf32> to vector<8x64xf32>
    %142 = arith.mulf %137, %141 : vector<8x64xf32>
    %143 = vector.broadcast %123 : vector<1x64xf32> to vector<8x64xf32>
    %144 = arith.mulf %142, %143 : vector<8x64xf32>
    %145 = vector.broadcast %124 : vector<1x64xf32> to vector<8x64xf32>
    %146 = arith.addf %144, %145 : vector<8x64xf32>
    %147 = arith.truncf %146 : vector<8x64xf32> to vector<8x64xbf16>
    %c0_41 = arith.constant 0 : index
    %c0_42 = arith.constant 0 : index
    %148 = vector.load %arg7[%c0_41, %c0_42] : memref<64x256xbf16, #tpu.memory_space<vmem>>, vector<64x256xbf16>
    %cst_43 = arith.constant dense<0.000000e+00> : vector<8x256xf32>
    %149 = tpu.matmul %147, %148, %cst_43 {dimension_numbers = #tpu.dot_dimension_numbers<[1], [0], [0], [1], [0, 0, 1, 1], [], []>} : vector<8x64xbf16>, vector<64x256xbf16>, vector<8x256xf32> -> vector<8x256xf32>
    %150 = vector.extract_strided_slice %1 {offsets = [4, 0], sizes = [1, 256], strides = [1, 1]} : vector<16x256xf32> to vector<1x256xf32>
    %151 = vector.broadcast %150 : vector<1x256xf32> to vector<8x256xf32>
    %152 = arith.addf %149, %151 : vector<8x256xf32>
    %cst_44 = arith.constant 0.000000e+00 : f32
    %153 = vector.broadcast %cst_44 : f32 to vector<8x256xf32>
    %154 = arith.maximumf %152, %153 : vector<8x256xf32>
    %155 = arith.truncf %154 : vector<8x256xf32> to vector<8x256xbf16>
    %c0_45 = arith.constant 0 : index
    %c0_46 = arith.constant 0 : index
    %156 = vector.load %arg8[%c0_45, %c0_46] : memref<256x64xbf16, #tpu.memory_space<vmem>>, vector<256x64xbf16>
    %cst_47 = arith.constant dense<0.000000e+00> : vector<8x64xf32>
    %157 = tpu.matmul %155, %156, %cst_47 {dimension_numbers = #tpu.dot_dimension_numbers<[1], [0], [0], [1], [0, 0, 1, 1], [], []>} : vector<8x256xbf16>, vector<256x64xbf16>, vector<8x64xf32> -> vector<8x64xf32>
    %158 = vector.extract_strided_slice %1 {offsets = [5, 0], sizes = [1, 64], strides = [1, 1]} : vector<16x256xf32> to vector<1x64xf32>
    %159 = vector.broadcast %158 : vector<1x64xf32> to vector<8x64xf32>
    %160 = arith.addf %157, %159 : vector<8x64xf32>
    %161 = arith.addf %122, %160 : vector<8x64xf32>
    %cst_48 = arith.constant 0.000000e+00 : f32
    %162 = vector.broadcast %cst_48 : f32 to vector<8x64xf32>
    %163 = arith.maximumf %161, %162 : vector<8x64xf32>
    %164 = arith.truncf %163 : vector<8x64xf32> to vector<8x64xbf16>
    %c0_49 = arith.constant 0 : index
    %c0_50 = arith.constant 0 : index
    %165 = vector.load %arg9[%c0_49, %c0_50] : memref<64x64xbf16, #tpu.memory_space<vmem>>, vector<64x64xbf16>
    %cst_51 = arith.constant dense<0.000000e+00> : vector<8x64xf32>
    %166 = tpu.matmul %164, %165, %cst_51 {dimension_numbers = #tpu.dot_dimension_numbers<[1], [0], [0], [1], [0, 0, 1, 1], [], []>} : vector<8x64xbf16>, vector<64x64xbf16>, vector<8x64xf32> -> vector<8x64xf32>
    %167 = vector.extract_strided_slice %1 {offsets = [6, 0], sizes = [1, 64], strides = [1, 1]} : vector<16x256xf32> to vector<1x64xf32>
    %168 = vector.broadcast %167 : vector<1x64xf32> to vector<8x64xf32>
    %169 = arith.addf %166, %168 : vector<8x64xf32>
    %cst_52 = arith.constant 0.000000e+00 : f32
    %170 = vector.broadcast %cst_52 : f32 to vector<8x64xf32>
    %171 = arith.maximumf %169, %170 : vector<8x64xf32>
    %172 = arith.truncf %171 : vector<8x64xf32> to vector<8x64xbf16>
    %c0_53 = arith.constant 0 : index
    %c0_54 = arith.constant 0 : index
    %173 = vector.load %arg10[%c0_53, %c0_54] : memref<64x128xbf16, #tpu.memory_space<vmem>>, vector<64x128xbf16>
    %cst_55 = arith.constant dense<0.000000e+00> : vector<8x128xf32>
    %174 = tpu.matmul %172, %173, %cst_55 {dimension_numbers = #tpu.dot_dimension_numbers<[1], [0], [0], [1], [0, 0, 1, 1], [], []>} : vector<8x64xbf16>, vector<64x128xbf16>, vector<8x128xf32> -> vector<8x128xf32>
    %175 = vector.extract_strided_slice %1 {offsets = [7, 0], sizes = [1, 128], strides = [1, 1]} : vector<16x256xf32> to vector<1x128xf32>
    %176 = vector.broadcast %175 : vector<1x128xf32> to vector<8x128xf32>
    %177 = arith.addf %174, %176 : vector<8x128xf32>
    %178 = math.tanh %177 : vector<8x128xf32>
    %c0_56 = arith.constant 0 : index
    %c0_57 = arith.constant 0 : index
    %179 = vector.load %arg12[%c0_56, %c0_57] : memref<8x128xf32, #tpu.memory_space<vmem>>, vector<8x128xf32>
    tpu.vector_store %arg12[%c0_56, %c0_57], %178 {strides = array<i32>} : memref<8x128xf32, #tpu.memory_space<vmem>>, vector<8x128xf32>,
    return
  }
  func.func @transform_0(%arg0: i32) -> (i32, i32) {
    %c0_i32 = arith.constant 0 : i32
    %c0_i32_0 = arith.constant 0 : i32
    return %arg0, %c0_i32 : i32, i32
  }
  func.func @transform_1(%arg0: i32) -> (i32, i32) {
    %c0_i32 = arith.constant 0 : i32
    %c0_i32_0 = arith.constant 0 : i32
    %c0_i32_1 = arith.constant 0 : i32
    return %c0_i32, %c0_i32_0 : i32, i32
  }
  func.func @transform_2(%arg0: i32) -> (i32, i32) {
    %c0_i32 = arith.constant 0 : i32
    %c0_i32_0 = arith.constant 0 : i32
    %c0_i32_1 = arith.constant 0 : i32
    return %c0_i32, %c0_i32_0 : i32, i32
  }
  func.func @transform_3(%arg0: i32) -> (i32, i32) {
    %c0_i32 = arith.constant 0 : i32
    %c0_i32_0 = arith.constant 0 : i32
    %c0_i32_1 = arith.constant 0 : i32
    return %c0_i32, %c0_i32_0 : i32, i32
  }
  func.func @transform_4(%arg0: i32) -> (i32, i32) {
    %c0_i32 = arith.constant 0 : i32
    %c0_i32_0 = arith.constant 0 : i32
    %c0_i32_1 = arith.constant 0 : i32
    return %c0_i32, %c0_i32_0 : i32, i32
  }
  func.func @transform_5(%arg0: i32) -> (i32, i32) {
    %c0_i32 = arith.constant 0 : i32
    %c0_i32_0 = arith.constant 0 : i32
    %c0_i32_1 = arith.constant 0 : i32
    return %c0_i32, %c0_i32_0 : i32, i32
  }
  func.func @transform_6(%arg0: i32) -> (i32, i32) {
    %c0_i32 = arith.constant 0 : i32
    %c0_i32_0 = arith.constant 0 : i32
    %c0_i32_1 = arith.constant 0 : i32
    return %c0_i32, %c0_i32_0 : i32, i32
  }
  func.func @transform_7(%arg0: i32) -> (i32, i32) {
    %c0_i32 = arith.constant 0 : i32
    %c0_i32_0 = arith.constant 0 : i32
    %c0_i32_1 = arith.constant 0 : i32
    return %c0_i32, %c0_i32_0 : i32, i32
  }
  func.func @transform_8(%arg0: i32) -> (i32, i32) {
    %c0_i32 = arith.constant 0 : i32
    %c0_i32_0 = arith.constant 0 : i32
    %c0_i32_1 = arith.constant 0 : i32
    return %c0_i32, %c0_i32_0 : i32, i32
  }
  func.func @transform_9(%arg0: i32) -> (i32, i32) {
    %c0_i32 = arith.constant 0 : i32
    %c0_i32_0 = arith.constant 0 : i32
    %c0_i32_1 = arith.constant 0 : i32
    return %c0_i32, %c0_i32_0 : i32, i32
  }
  func.func @transform_10(%arg0: i32) -> (i32, i32) {
    %c0_i32 = arith.constant 0 : i32
    %c0_i32_0 = arith.constant 0 : i32
    %c0_i32_1 = arith.constant 0 : i32
    return %c0_i32, %c0_i32_0 : i32, i32
  }
  func.func @transform_11(%arg0: i32) -> (i32, i32) {
    %c0_i32 = arith.constant 0 : i32
    %c0_i32_0 = arith.constant 0 : i32
    return %arg0, %c0_i32 : i32, i32
  }
}

</mosaic_0001>

<bundles_post_ra>
// kernel: _embed_decide.1
= control target key start
LH: loop header
LB: loop body
LE: loop exit
PB: predicated region body
PF: predicated region fallthrough
CT: control target
= control target key end

     0   :  { %s1893_s17 = smov 0   ;;  %s2241_s0 = inlined_call_operand.vmem [shape: f32[16,16], index: 0, kind: input, shape index: {}]   ;;  %s2242_s1 = inlined_call_operand.vmem [shape: bf16[16,8], index: 1, kind: input, shape index: {}]   ;;  %s2243_s2 = inlined_call_operand.vmem [shape: bf16[16,128], index: 2, kind: input, shape index: {}]   ;;  %s2244_s3 = inlined_call_operand.vmem [shape: bf16[128,128], index: 3, kind: input, shape index: {}]   ;;  %s2245_s4 = inlined_call_operand.vmem [shape: bf16[128,192], index: 4, kind: input, shape index: {}]   ;;  %s2246_s5 = inlined_call_operand.vmem [shape: bf16[64,64], index: 5, kind: input, shape index: {}]   ;;  %s2247_s6 = inlined_call_operand.vmem [shape: bf16[64,256], index: 6, kind: input, shape index: {}]   ;;  %s2248_s7 = inlined_call_operand.vmem [shape: bf16[256,64], index: 7, kind: input, shape index: {}]   ;;  %s2249_s8 = inlined_call_operand.vmem [shape: bf16[64,64], index: 8, kind: input, shape index: {}]   ;;  %s2250_s9 = inlined_call_operand.vmem [shape: bf16[64,128], index: 9, kind: input, shape index: {}]   ;;  %s2251_s10 = inlined_call_operand.vmem [shape: f32[16,256], index: 10, kind: input, shape index: {}]   ;;  %s2252_s11 = inlined_call_operand.vmem [shape: f32[16,128], index: 11, kind: output, shape index: {}]  }
   0x1 LB: > { %s1511_s18 = sadd.s32 4294967295, %s1826_s17   ;;  %p1515_p0 = scmp.ge.s32.totalorder %s1826_s17, 1  ;;  %s1826_s17 = sphi %s1893_s17, %s21_s17  }
   0x2   : > { %p336_p1 = scmp.lt.s32.totalorder %s1826_s17, 3 }
   0x4   : > { %p337_p2 = pnand %p1515_p0, %p336_p1 }
   0x5   : > { %v1731_v0 = vld [vmem:[%s2243_s2] sm:$0xff] (!%p337_p2)   ;;  %v1828_v1 = vmov (!%p337_p2), 0.0   ;;  %p374_p3 = scmp.lt.s32.totalorder (!%p337_p2), %s1511_s18, 1  ;;  %vm1829_vm0 = vmmov (!%p337_p2), 0   ;;  %v1733_v3 = vld [vmem:[%s2244_s3 + $0x8] sm:$0xff] (!%p337_p2)   ;;  %vm400_vm1 = vcmask (!%p337_p2), 130048   ;;  %v390_v12 = vlaneseq (!%p337_p2) }
   0x6   : > { %340 = sbr.rel (%p337_p2) target bundleno = 3507 (0xdb3), region = 64  ;;  %1644 = vmatprep.subr.bf16.mxu0 (!%p337_p2), %v1828_v1  ;;  %1650 = vmatprep.subr.bf16.mxu1 (!%p337_p2), %v1828_v1  ;;  %v1732_v2 = vld [vmem:[%s2244_s3] sm:$0xff] (!%p337_p2)   ;;  %v1734_v5 = vld [vmem:[%s2244_s3 + $0x10] sm:$0xff] (!%p337_p2)   ;;  %v1735_v7 = vld [vmem:[%s2244_s3 + $0x18] sm:$0xff] (!%p337_p2)   ;;  %vm555_vm2 = vcmask (!%p337_p2), 523264   ;;  %s1830_s27 = smov (!%p337_p2), 64  }
   0x7   : > { %1645 = vmatpush3.bf16.msra.mxu0 (!%p337_p2), %v1731_v0  ;;  %1646 = vmatprep.mubr.msk.bf16.mxu0 (!%p337_p2), %vm1829_vm0, %v1828_v1  ;;  %v1736_v8 = vld [vmem:[%s2244_s3 + $0x20] sm:$0xff] (!%p337_p2)   ;;  %v1737_v9 = vld [vmem:[%s2244_s3 + $0x28] sm:$0xff] (!%p337_p2)   ;;  %v1738_v10 = vld [vmem:[%s2244_s3 + $0x30] sm:$0xff] (!%p337_p2)   ;;  %v1951_v13 = vshrl.u32 (!%p337_p2), %v390_v12, 7  ;;  %vm865_vm3 = vcmask (!%p337_p2), 1043456   ;;  %vm1832_vm5 = vmmov (!%p337_p2), 1  }
   0x8   : > { %1651 = vmatpush3.bf16.msra.mxu1 (!%p337_p2), %v1732_v2  ;;  %1666 = vmatprep.mubr.msk.bf16.mxu1 (!%p337_p2), %vm1829_vm0, %v1828_v1  ;;  %v1739_v11 = vld [vmem:[%s2244_s3 + $0x38] sm:$0xff] (!%p337_p2)   ;;  %v1957_v15 = vld [vmem:[%s2251_s10] sm:$0xff] (!%p337_p2)  ;;  %v1987_v45 = vld [vmem:[%s2251_s10 + $0x10] sm:$0xff] (!%p337_p2)  ;;  %vm837_vm9 = vcmask (!%p337_p2), 64512  }
   0x9   : > { %1652 = vmatprep.subr.bf16.mxu1 (!%p337_p2), %v1828_v1  ;;  %v392_v14 = vsub.s32 (!%p337_p2), 0, %v1951_v13  ;;  %v464_v24 = vsub.s32 (!%p337_p2), 1, %v1951_v13  ;;  %v612_v44 = vsub.s32 (!%p337_p2), 3, %v1951_v13  ;;  %v1740_v47 = vld [vmem:[%s2245_s4] ss:$8 sps:$4 sm:$0xff] (!%p337_p2)   ;;  %v603_v55 = vsub.s32 (!%p337_p2), 2, %v1951_v13 }
   0xa   : > { %v1742_v48 = vld [vmem:[%s2245_s4 + $0x4] ss:$8 sps:$4 sm:$0xff] (!%p337_p2)   ;;  %v1745_v49 = vld [vmem:[%s2245_s4 + $0x14] ss:$8 sps:$4 sm:$0xff] (!%p337_p2)   ;;  %v1743_v50 = vld [vmem:[%s2245_s4 + $0x10] ss:$8 sps:$4 sm:$0xff] (!%p337_p2)  }
   0xb   : > { %v393_v16 = vrot.slane (!%p337_p2), %v1957_v15, %v392_v14  ;;  %v465_v25 = vrot.slane (!%p337_p2), %v1957_v15, %v464_v24  ;;  %v613_v46 = vrot.slane (!%p337_p2), %v1987_v45, %v612_v44  ;;  %725 = vmatprep.subr.bf16.mxu0 (!%p337_p2), %v1742_v48  ;;  %v1748_v53 = vld [vmem:[%s2245_s4 + $0x24] ss:$8 sps:$4 sm:$0xff] (!%p337_p2)   ;;  %v1746_v54 = vld [vmem:[%s2245_s4 + $0x20] ss:$8 sps:$4 sm:$0xff] (!%p337_p2)   ;;  %v1751_v56 = vld [vmem:[%s2245_s4 + $0x34] ss:$8 sps:$4 sm:$0xff] (!%p337_p2)   ;;  %v604_v58 = vrot.slane (!%p337_p2), %v1987_v45, %v603_v55 }
   0xc   : > { %1653 = vmatpush3.bf16.msra.mxu1 (!%p337_p2), %v1733_v3  ;;  %v1749_v57 = vld [vmem:[%s2245_s4 + $0x30] ss:$8 sps:$4 sm:$0xff] (!%p337_p2)   ;;  %v1754_v59 = vld [vmem:[%s2245_s4 + $0x44] ss:$8 sps:$4 sm:$0xff] (!%p337_p2)   ;;  %v1752_v60 = vld [vmem:[%s2245_s4 + $0x40] ss:$8 sps:$4 sm:$0xff] (!%p337_p2)  }
   0xd   : > { %s2254_s18 = smov (!%p374_p3, %s1511_s18), 1  ;;  %1654 = vmatprep.subr.bf16.mxu1 %v1828_v1  ;;  %v1757_v61 = vld [vmem:[%s2245_s4 + $0x54] ss:$8 sps:$4 sm:$0xff]   ;;  %v1755_v62 = vld [vmem:[%s2245_s4 + $0x50] ss:$8 sps:$4 sm:$0xff]  }
   0xe   : > { %s1516_s25 = sshll.u32 %s2254_s18, 3  ;;  %v1760_v63 = vld [vmem:[%s2245_s4 + $0x64] ss:$8 sps:$4 sm:$0xff]   ;;  %v1758_v0 = vld [vmem:[%s2245_s4 + $0x60] ss:$8 sps:$4 sm:$0xff]  }
   0xf   : > { %s377_s28 = scalar_lea.vmem %s2241_s0, %s1516_s25  ;;  %v1763_v2 = vld [vmem:[%s2245_s4 + $0x74] ss:$8 sps:$4 sm:$0xff]   ;;  %v1761_v3 = vld [vmem:[%s2245_s4 + $0x70] ss:$8 sps:$4 sm:$0xff]   ;;  %s381_s30 = scalar_lea.vmem %s2252_s11, %s1516_s25 }
  0x10   : > { %v383_v4 = vld [vmem:[%s377_s28] sm:$0xff]  ;;  %1655 = vmatpush3.bf16.msra.mxu1 %v1734_v5 }
  0x11   : > { %v387_v6 = vpack.c.bf16 %v383_v4, %v383_v4  ;;  %1656 = vmatprep.subr.bf16.mxu1 %v1828_v1  ;;  %v1831_v4 = vmov 0  }
  0x13   : > { %1647 = vmatmul.mubr.msk.bf16.vlgmr.msra.gmra.mrb[0].mxu0 %vm400_vm1, %v387_v6 }
  0x14   : > { %1657 = vmatpush3.bf16.msra.mxu1 %v1735_v7  ;;  %726 = vmatpush1.bf16.msra.mxu0 %v1740_v47 }
  0x15   : > { %1658 = vmatprep.subr.bf16.mxu1 %v1828_v1  ;;  %727 = vmatprep.subr.bf16.mxu0 %v1745_v49 }
  0x16   : > { %757 = vmatprep.mubr.bf16.mxu0 %v1831_v4 }
  0x18   : > { %1659 = vmatpush3.bf16.msra.mxu1 %v1736_v8  ;;  %728 = vmatpush1.bf16.msra.mxu0 %v1743_v50 }
  0x19   : > { %1660 = vmatprep.subr.bf16.mxu1 %v1828_v1  ;;  %729 = vmatprep.subr.bf16.mxu0 %v1748_v53 }
  0x1c   : > { %1661 = vmatpush3.bf16.msra.mxu1 %v1737_v9  ;;  %730 = vmatpush1.bf16.msra.mxu0 %v1746_v54 }
  0x1d   : > { %1662 = vmatprep.subr.bf16.mxu1 %v1828_v1  ;;  %731 = vmatprep.subr.bf16.mxu0 %v1751_v56 }
  0x20   : > { %1663 = vmatpush3.bf16.msra.mxu1 %v1738_v10  ;;  %732 = vmatpush1.bf16.msra.mxu0 %v1749_v57 }
  0x21   : > { %1664 = vmatprep.subr.bf16.mxu1 %v1828_v1  ;;  %733 = vmatprep.subr.bf16.mxu0 %v1754_v59 }
  0x24   : > { %1665 = vmatpush3.bf16.msra.mxu1 %v1739_v11  ;;  %734 = vmatpush1.bf16.msra.mxu0 %v1752_v60 }
  0x25   : > { %1670 = vmatprep.subr.bf16.mxu1 %v1828_v1  ;;  %735 = vmatprep.subr.bf16.mxu0 %v1757_v61 }
  0x28   : > { %736 = vmatpush1.bf16.msra.mxu0 %v1755_v62 }
  0x29   : > { %737 = vmatprep.subr.bf16.mxu0 %v1760_v63 }
  0x2c   : > { %738 = vmatpush1.bf16.msra.mxu0 %v1758_v0 }
  0x2d   : > { %739 = vmatprep.subr.bf16.mxu0 %v1763_v2 }
  0x30   : > { %740 = vmatpush1.bf16.msra.mxu0 %v1761_v3 }
  0x31   : > { %1676 = vmatprep.subr.bf16.mxu0 %v1828_v1 }
  0xe6   : > { %v438_v17 = vpop.f32.mrb[0].mxu0 }
  0xe7   : > { %v439_v18 = vadd.f32 %v438_v17, %v393_v16  ;;  %v1648_v19 = vpop.f32.mrb[1].mxu0  ;;  %v573_v16 = vrot.slane %v1987_v45, %v392_v14  ;;  %v2060_v14 = vld [vmem:[%s2251_s10 + $0x8] sm:$0xff] }
  0xe8   : > { %v441_v20 = vpop.f32.mrb[2].mxu0 }
  0xe9   : > { %v444_v21 = vmax.f32 %v439_v18, 0.0  ;;  %v1649_v22 = vpop.f32.mrb[3].mxu0  ;;  %v578_v20 = vrot.slane %v1987_v45, %v464_v24  ;;  %v640_v24 = vrot.slane %v1957_v15, %v603_v55 }
  0xeb   : > { %v445_v23 = vpack.c.bf16 %v444_v21, %v444_v21 }
  0xed   : > { %1667 = vmatmul.mubr.bf16.vlgmr.msra.gmra.mrb[0].mxu1 %v445_v23 }
  0xee   : > { %1672 = vmatprep.mubr.msk.bf16.mxu1 %vm1829_vm0, %v1828_v1 }
 0x1c0   : > { %v548_v26 = vpop.f32.mrb[0].mxu1 }
 0x1c1   : > { %v549_v27 = vadd.f32 %v548_v26, %v465_v25  ;;  %v1668_v28 = vpop.f32.mrb[1].mxu1 }
 0x1c2   : > { %v551_v29 = vpop.f32.mrb[2].mxu1 }
 0x1c3   : > { %v1968_v30 = vmax.f32 %v549_v27, 0.0  ;;  %v1669_v31 = vpop.f32.mrb[3].mxu1 }
 0x1c4   : > { %v644_v31 = vrot.slane %v2060_v14, %v603_v55 }
 0x1c5   : > { %581 = vrot.lane.b32.xlu0 %v1968_v30, %s1830_s27  ;;  %v556_v32 = vsel %vm555_vm2, %v1968_v30, 0.0 }
 0x1c6   : > { %557 = vadd.xlane.f32.xlu1 %v556_v32 }
 0x237   : > { %v582_v33 = vpop.permute.xlu0 %581 }
 0x238   : > { %v584_v34 = vsel %vm555_vm2, %v582_v33, 0.0 }
 0x239   : > { %585 = vadd.xlane.f32.xlu0 %v584_v34 }
 0x253   : > { %v558_v39 = vpop.xlane.xlu1 %557 }
 0x254   : > { %v560_v40 = vmul.f32 0.015625, %v558_v39 }
 0x256   : > { %v561_v41 = vsub.f32 %v1968_v30, %v560_v40 }
 0x258   : > { %v562_v42 = vmul.f32 %v561_v41, %v561_v41 }
 0x25a   : > { %v563_v43 = vsel %vm555_vm2, %v562_v42, 0.0 }
 0x2c6   : > { %v586_v35 = vpop.xlane.xlu0 %585 }
 0x2c7   : > { %v587_v36 = vmul.f32 0.015625, %v586_v35 }
 0x2c9   : > { %v1976_v37 = vsub.f32 %v1968_v30, %v587_v36 }
 0x2cb   : > { %v589_v38 = vmul.f32 %v1976_v37, %v1976_v37 }
 0x2cd   : > { %591 = vrot.lane.b32.xlu1 %v589_v38, %s1830_s27 }
 0x2f1   : > { %564 = vadd.xlane.f32.xlu1 %v563_v43 }
 0x302   : > { %615 = vrot.lane.b32.xlu1 %v613_v46, %s1830_s27 }
 0x33f   : > { %v592_v51 = vpop.permute.xlu1 %591 }
 0x340   : > { %v594_v52 = vsel %vm555_vm2, %v592_v51, 0.0 }
 0x341   : > { %595 = vadd.xlane.f32.xlu0 %v594_v52 }
 0x357   : > { %606 = vrot.lane.b32.xlu0 %v604_v58, %s1830_s27 }
 0x37e   : > { %v565_v5 = vpop.xlane.xlu1 %564 }
 0x37f   : > { %v566_v6 = vmul.f32 0.015625, %v565_v5 }
 0x381   : > { %v567_v7 = vadd.f32 1e-05, %v566_v6 }
 0x382   : > { %v616_v23 = vpop.permute.xlu1 %615 }
 0x383   : > { %1804 = vrsqrt.f32 %v567_v7 }
 0x38d   : > { %v1805_v11 = vpop.eup %1804 }
 0x38e   : > { %v569_v17 = vmul.f32 %v1805_v11, %v561_v41  ;;  %v2066_v41 = vand.u32 127, %v390_v12  ;;  %v1589_v12 = vld [vmem:[%s2242_s1] sm:$0xff]  }
 0x38f   : > { %v1590_v50 = vunpack.c.l.bf16 %v1589_v12  ;;  %v1591_v51 = vunpack.c.h.bf16 %v1589_v12  ;;  %v1780_v12 = vld [vmem:[%s2248_s7 + $0x40] sm:$0xff]  }
 0x390   : > { %v574_v22 = vmul.f32 %v573_v16, %v569_v17  ;;  %vm774_vm4 = vcmp.ge.s32.totalorder %v2066_v41, 32  ;;  %vm910_vm10 = vcmp.lt.s32.totalorder %v2066_v41, 32 }
 0x391   : > { %vm776_vm6 = vmxor %vm1832_vm5, %vm774_vm4 }
 0x392   : > { %v579_v26 = vadd.f32 %v578_v20, %v574_v22  ;;  %vm777_vm7 = vmxor %vm774_vm4, %vm1832_vm5  ;;  %v1767_v22 = vld [vmem:[%s2246_s5 + $0x18] sm:$0xff]  }
 0x393   : > { %vm778_vm8 = vmxor %vm776_vm6, %vm1832_vm5 }
 0x3ce   : > { %v596_v8 = vpop.xlane.xlu0 %595 }
 0x3cf   : > { %v597_v9 = vmul.f32 0.015625, %v596_v8  ;;  %v1764_v8 = vld [vmem:[%s2246_s5] sm:$0xff]  }
 0x3d1   : > { %v598_v10 = vadd.f32 1e-05, %v597_v9  ;;  %v1765_v9 = vld [vmem:[%s2246_s5 + $0x8] sm:$0xff]  }
 0x3d2   : > { %v607_v19 = vpop.permute.xlu0 %606 }
 0x3d3   : > { %1806 = vrsqrt.f32 %v598_v10  ;;  %v1766_v10 = vld [vmem:[%s2246_s5 + $0x10] sm:$0xff]  }
 0x3dd   : > { %v1807_v18 = vpop.eup %1806 }
 0x3de   : > { %v600_v21 = vmul.f32 %v1807_v18, %v1976_v37 }
 0x3e0   : > { %v609_v25 = vmul.f32 %v607_v19, %v600_v21 }
 0x3e2   : > { %v618_v27 = vadd.f32 %v616_v23, %v609_v25 }
 0x3e4   : > { %v619_v28 = vsel %vm555_vm2, %v579_v26, %v618_v27 }
 0x3e5   : > { %v620_v29 = vpack.c.bf16 %v619_v28, %v619_v28 }
 0x3e7   : > { %758 = vmatmul.mubr.bf16.vlgmr.msra.gmra.mrb[4].mxu0 %v620_v29 }
 0x3e8   : > { %1678 = vmatprep.mubr.msk.bf16.mxu0 %vm1829_vm0, %v1828_v1 }
 0x4ba   : > { %v759_v32 = vpop.f32.mrb[4].mxu0 }
 0x4bb   : > { %v760_v33 = vadd.f32 %v759_v32, %v640_v24  ;;  %v761_v34 = vpop.f32.mrb[5].mxu0  ;;  %v924_v24 = vrot.slane %v1957_v15, %v612_v44  ;;  %v1770_v44 = vld [vmem:[%s2247_s6 + $0x4] ss:$8 sps:$4 sm:$0xff]  }
 0x4bc   : > { %v762_v35 = vadd.f32 %v761_v34, %v644_v31  ;;  %v763_v36 = vpop.f32.mrb[6].mxu0 }
 0x4bd   : > { %v782_v37 = vpack.c.bf16 %v760_v33, %v760_v33  ;;  %v764_v38 = vpop.f32.mrb[7].mxu0  ;;  %v766_v42 = vmul.f32 0.17677669, %v760_v33 }
 0x4be   : > { %v861_v39 = vpack.c.bf16 %v762_v35, %v762_v35 }
 0x4bf   : > { %788 = vrot.lane.b32.xlu0 %v782_v37, %s1830_s27  ;;  %v779_v47 = vsel %vm777_vm7, %v766_v42, 0.0  ;;  %v780_v48 = vsel %vm778_vm8, %v766_v42, 0.0  ;;  %v1773_v42 = vld [vmem:[%s2247_s6 + $0x14] ss:$8 sps:$4 sm:$0xff]  }
 0x4c0   : > { %v867_v40 = vsel %vm865_vm3, %v861_v39, 0  ;;  %v781_v49 = vpack.c.bf16 %v780_v48, %v779_v47  ;;  %v1774_v47 = vld [vmem:[%s2247_s6 + $0x20] ss:$8 sps:$4 sm:$0xff]   ;;  %v1777_v48 = vld [vmem:[%s2247_s6 + $0x30] ss:$8 sps:$4 sm:$0xff]  }
 0x4c1   : > { %1677 = vmatpush3.bf16.msra.mxu0 %v867_v40 }
 0x4c2   : > { %1076 = vmatprep.subr.bf16.mxu0 %v1770_v44 }
 0x531   : > { %v789_v43 = vpop.permute.xlu0 %788 }
 0x532   : > { %v794_v46 = vsel %vm555_vm2, %v789_v43, 0  ;;  %v1771_v43 = vld [vmem:[%s2247_s6 + $0x10] ss:$8 sps:$4 sm:$0xff]  }
 0x533   : > { %1671 = vmatpush3.bf16.xpose.msra.mxu1 %v794_v46  ;;  %v1776_v46 = vld [vmem:[%s2247_s6 + $0x24] ss:$8 sps:$4 sm:$0xff]  }
 0x534   : > { %1682 = vmatprep.subr.bf16.mxu1 %v1828_v1 }
 0x53a   : > { %1673 = vmatmul.mubr.msk.bf16.vlgmr.msra.gmra.mrb[4].mxu1 %vm555_vm2, %v781_v49  ;;  %v1779_v49 = vld [vmem:[%s2247_s6 + $0x34] ss:$8 sps:$4 sm:$0xff]  }
 0x53b   : > { %1690 = vmatprep.mubr.msk.bf16.mxu1 %vm1829_vm0, %v1828_v1  ;;  %1683 = vmatpush3.bf16.msra.mxu1 %v1764_v8 }
 0x53c   : > { %1684 = vmatprep.subr.bf16.mxu1 %v1828_v1 }
 0x53f   : > { %1685 = vmatpush3.bf16.msra.mxu1 %v1765_v9 }
 0x540   : > { %1686 = vmatprep.subr.bf16.mxu1 %v1828_v1 }
 0x543   : > { %1687 = vmatpush3.bf16.msra.mxu1 %v1766_v10 }
 0x544   : > { %1688 = vmatprep.subr.bf16.mxu1 %v1828_v1 }
 0x547   : > { %1689 = vmatpush3.bf16.msra.mxu1 %v1767_v22 }
 0x548   : > { %1612 = vmatprep.subr.bf16.mxu1 %v1780_v12 }
 0x60d   : > { %v830_v52 = vpop.f32.mrb[4].mxu1 }
 0x60e   : > { %v831_v53 = vadd.f32 %v1590_v50, %v830_v52  ;;  %v1674_v54 = vpop.f32.mrb[5].mxu1  ;;  %v1781_v50 = vld [vmem:[%s2248_s7] sm:$0xff]   ;;  %v1783_v52 = vld [vmem:[%s2248_s7 + $0x8] sm:$0xff]  }
 0x60f   : > { %v833_v55 = vpop.f32.mrb[6].mxu1  ;;  %v1785_v54 = vld [vmem:[%s2248_s7 + $0x10] sm:$0xff]  }
 0x610   : > { %v834_v56 = vadd.f32 %v1591_v51, %v833_v55  ;;  %v1675_v57 = vpop.f32.mrb[7].mxu1  ;;  %v838_v58 = vsel %vm837_vm9, %v831_v53, -inf  ;;  %v1782_v51 = vld [vmem:[%s2248_s7 + $0x48] sm:$0xff]   ;;  %v1786_v55 = vld [vmem:[%s2248_s7 + $0x58] sm:$0xff]  }
 0x611   : > { %839 = vmax.xlane.f32.xlu0 %v838_v58  ;;  %v1788_v57 = vld [vmem:[%s2248_s7 + $0x60] sm:$0xff]  }
 0x612   : > { %v841_v59 = vsel %vm837_vm9, %v834_v56, -inf  ;;  %v1789_v58 = vld [vmem:[%s2248_s7 + $0x20] sm:$0xff]  }
 0x613   : > { %842 = vmax.xlane.f32.xlu1 %v841_v59  ;;  %v1790_v59 = vld [vmem:[%s2248_s7 + $0x68] sm:$0xff]  }
 0x69e   : > { %v840_v60 = vpop.xlane.xlu0 %839 }
 0x69f   : > { %v844_v61 = vsub.f32 %v831_v53, %v840_v60  ;;  %v1784_v53 = vld [vmem:[%s2248_s7 + $0x50] sm:$0xff]   ;;  %v1791_v60 = vld [vmem:[%s2248_s7 + $0x28] sm:$0xff]  }
 0x6a0   : > { %v843_v62 = vpop.xlane.xlu1 %842 }
 0x6a1   : > { %v846_v63 = vmul.f32 1.442695, %v844_v61  ;;  %v845_v0 = vsub.f32 %v834_v56, %v843_v62  ;;  %v1787_v56 = vld [vmem:[%s2248_s7 + $0x18] sm:$0xff]  }
 0x6a3   : > { %1808 = vpow2.f32 %v846_v63  ;;  %v848_v2 = vmul.f32 1.442695, %v845_v0  ;;  %v1008_v0 = vsub.s32 4, %v1951_v13 }
 0x6a5   : > { %1810 = vpow2.f32 %v848_v2  ;;  %v1013_v2 = vsub.s32 5, %v1951_v13 }
 0x6ad   : > { %v1809_v3 = vpop.eup %1808 }
 0x6ae   : > { %v850_v5 = vsel %vm837_vm9, %v1809_v3, 0.0 }
 0x6af   : > { %v1811_v6 = vpop.eup %1810  ;;  %851 = vadd.xlane.f32.xlu0 %v850_v5 }
 0x6b0   : > { %v853_v7 = vsel %vm837_vm9, %v1811_v6, 0.0 }
 0x6b3   : > { %854 = vadd.xlane.f32.xlu0 %v853_v7  ;;  %v1014_v7 = vrot.slane %v1987_v45, %v1013_v2 }
 0x73c   : > { %v852_v11 = vpop.xlane.xlu0 %851 }
 0x73d   : > { %1812 = vrcp.f32 %v852_v11  ;;  %v1792_v11 = vld [vmem:[%s2248_s7 + $0x70] sm:$0xff]  }
 0x740   : > { %v855_v16 = vpop.xlane.xlu0 %854 }
 0x741   : > { %1814 = vrcp.f32 %v855_v16  ;;  %v1793_v16 = vld [vmem:[%s2248_s7 + $0x30] sm:$0xff]  }
 0x747   : > { %v1813_v17 = vpop.eup %1812 }
 0x748   : > { %v858_v19 = vmul.f32 %v1813_v17, %v1809_v3  ;;  %v1009_v3 = vrot.slane %v1987_v45, %v1008_v0  ;;  %v1794_v45 = vld [vmem:[%s2248_s7 + $0x78] sm:$0xff]  }
 0x749   : > { %v1795_v17 = vld [vmem:[%s2248_s7 + $0x38] sm:$0xff]  }
 0x74b   : > { %v1815_v18 = vpop.eup %1814 }
 0x74c   : > { %v859_v20 = vmul.f32 %v1815_v18, %v1811_v6  ;;  %v1796_v18 = vld [vmem:[%s2249_s8] sm:$0xff]  }
 0x74e   : > { %v860_v21 = vpack.c.bf16 %v859_v20, %v858_v19  ;;  %v1028_v19 = vrot.slane %v1957_v15, %v1008_v0  ;;  %v1032_v20 = vrot.slane %v2060_v14, %v1008_v0  ;;  %v1798_v14 = vld [vmem:[%s2249_s8 + $0x10] sm:$0xff]  }
 0x750   : > { %1679 = vmatmul.mubr.msk.bf16.vlgmr.msra.gmra.mrb[8].mxu0 %vm837_vm9, %v860_v21 }
 0x751   : > { %1108 = vmatprep.mubr.bf16.mxu0 %v1831_v4 }
 0x823   : > { %v903_v23 = vpop.f32.mrb[8].mxu0 }
 0x824   : > { %v1680_v25 = vpop.f32.mrb[9].mxu0 }
 0x825   : > { %v906_v26 = vpop.f32.mrb[10].mxu0 }
 0x826   : > { %v911_v27 = vsel %vm910_vm10, %v903_v23, %v906_v26  ;;  %v1681_v28 = vpop.f32.mrb[11].mxu0 }
 0x827   : > { %v912_v29 = vpack.c.bf16 %v911_v27, %v911_v27 }
 0x829   : > { %1691 = vmatmul.mubr.msk.bf16.vlgmr.msra.gmra.mrb[8].mxu1 %vm555_vm2, %v912_v29 }
 0x82a   : > { %1613 = vmatpush3.bf16.msra.mxu1 %v1781_v50 }
 0x82b   : > { %1614 = vmatprep.subr.bf16.mxu1 %v1782_v51 }
 0x82e   : > { %1615 = vmatpush3.bf16.msra.mxu1 %v1783_v52 }
 0x82f   : > { %1616 = vmatprep.subr.bf16.mxu1 %v1784_v53 }
 0x832   : > { %1617 = vmatpush3.bf16.msra.mxu1 %v1785_v54 }
 0x833   : > { %1618 = vmatprep.subr.bf16.mxu1 %v1786_v55 }
 0x836   : > { %1619 = vmatpush3.bf16.msra.mxu1 %v1787_v56 }
 0x837   : > { %1620 = vmatprep.subr.bf16.mxu1 %v1788_v57 }
 0x83a   : > { %1621 = vmatpush3.bf16.msra.mxu1 %v1789_v58 }
 0x83b   : > { %1622 = vmatprep.subr.bf16.mxu1 %v1790_v59 }
 0x83e   : > { %1623 = vmatpush3.bf16.msra.mxu1 %v1791_v60 }
 0x83f   : > { %1624 = vmatprep.subr.bf16.mxu1 %v1792_v11 }
 0x842   : > { %1625 = vmatpush3.bf16.msra.mxu1 %v1793_v16 }
 0x843   : > { %1626 = vmatprep.subr.bf16.mxu1 %v1794_v45 }
 0x846   : > { %1627 = vmatpush3.bf16.msra.mxu1 %v1795_v17 }
 0x8fc   : > { %v986_v4 = vpop.f32.mrb[8].mxu1 }
 0x8fd   : > { %v987_v31 = vadd.f32 %v986_v4, %v924_v24  ;;  %v1692_v32 = vpop.f32.mrb[9].mxu1 }
 0x8fe   : > { %v989_v33 = vpop.f32.mrb[10].mxu1  ;;  %v1799_v32 = vld [vmem:[%s2249_s8 + $0x18] sm:$0xff]  }
 0x8ff   : > { %v2104_v34 = vadd.f32 %v987_v31, %v1968_v30  ;;  %v1693_v35 = vpop.f32.mrb[11].mxu1  ;;  %v1768_v30 = vld [vmem:[%s2247_s6] ss:$8 sps:$4 sm:$0xff]  }
 0x900   : > { %1077 = vmatpush1.bf16.msra.mxu0 %v1768_v30  ;;  %v1797_v31 = vld [vmem:[%s2249_s8 + $0x8] sm:$0xff]   ;;  %v1156_v35 = vrot.slane %v1957_v15, %v1013_v2  ;;  %v1800_v30 = vld [vmem:[%s2250_s9] sm:$0xff]  }
 0x901   : > { %v993_v36 = vsel %vm555_vm2, %v2104_v34, 0.0  ;;  %1078 = vmatprep.subr.bf16.mxu0 %v1773_v42 }
 0x902   : > { %994 = vadd.xlane.f32.xlu0 %v993_v36 }
 0x904   : > { %1079 = vmatpush1.bf16.msra.mxu0 %v1771_v43  ;;  %v1801_v43 = vld [vmem:[%s2250_s9 + $0x8] sm:$0xff]  }
 0x905   : > { %1080 = vmatprep.subr.bf16.mxu0 %v1776_v46  ;;  %v1803_v46 = vld [vmem:[%s2250_s9 + $0x18] sm:$0xff]  }
 0x908   : > { %1081 = vmatpush1.bf16.msra.mxu0 %v1774_v47  ;;  %v1306_v47 = vsub.s32 6, %v1951_v13 }
 0x909   : > { %1082 = vmatprep.subr.bf16.mxu0 %v1779_v49 }
 0x90c   : > { %1083 = vmatpush1.bf16.msra.mxu0 %v1777_v48  ;;  %v1307_v48 = vrot.slane %v1957_v15, %v1306_v47 }
 0x90d   : > { %1694 = vmatprep.subr.bf16.mxu0 %v1828_v1 }
 0x98f   : > { %v995_v37 = vpop.xlane.xlu0 %994 }
 0x990   : > { %v996_v38 = vmul.f32 0.015625, %v995_v37 }
 0x992   : > { %v997_v39 = vsub.f32 %v2104_v34, %v996_v38 }
 0x994   : > { %v998_v40 = vmul.f32 %v997_v39, %v997_v39 }
 0x996   : > { %v999_v41 = vsel %vm555_vm2, %v998_v40, 0.0 }
 0x997   : > { %1000 = vadd.xlane.f32.xlu0 %v999_v41 }
 0xa24   : > { %v1001_v61 = vpop.xlane.xlu0 %1000 }
 0xa25   : > { %v1002_v62 = vmul.f32 0.015625, %v1001_v61 }
 0xa27   : > { %v1003_v63 = vadd.f32 1e-05, %v1002_v62 }
 0xa29   : > { %1816 = vrsqrt.f32 %v1003_v63 }
 0xa33   : > { %v1817_v5 = vpop.eup %1816 }
 0xa34   : > { %v1005_v6 = vmul.f32 %v1817_v5, %v997_v39 }
 0xa36   : > { %v1010_v8 = vmul.f32 %v1009_v3, %v1005_v6 }
 0xa38   : > { %v1015_v9 = vadd.f32 %v1014_v7, %v1010_v8 }
 0xa3a   : > { %v1016_v10 = vpack.c.bf16 %v1015_v9, %v1015_v9 }
 0xa3c   : > { %1559 = vmatmul.mubr.msk.bf16.vlgmr.msra.gmra.mrb[12].mxu0 %vm555_vm2, %v1016_v10 }
 0xa3d   : > { %1702 = vmatprep.mubr.msk.bf16.mxu0 %vm1829_vm0, %v1828_v1  ;;  %1695 = vmatpush3.bf16.msra.mxu0 %v1796_v18 }
 0xa3e   : > { %1696 = vmatprep.subr.bf16.mxu0 %v1828_v1 }
 0xa41   : > { %1697 = vmatpush3.bf16.msra.mxu0 %v1797_v31 }
 0xa42   : > { %1698 = vmatprep.subr.bf16.mxu0 %v1828_v1 }
 0xa45   : > { %1699 = vmatpush3.bf16.msra.mxu0 %v1798_v14 }
 0xa46   : > { %1700 = vmatprep.subr.bf16.mxu0 %v1828_v1 }
 0xa49   : > { %1701 = vmatpush3.bf16.msra.mxu0 %v1799_v32 }
 0xa4a   : > { %1706 = vmatprep.subr.bf16.mxu0 %v1828_v1 }
 0xb0f   : > { %v1110_v21 = vpop.f32.mrb[12].mxu0 }
 0xb10   : > { %v1111_v22 = vadd.f32 %v1110_v21, %v1028_v19  ;;  %v1112_v23 = vpop.f32.mrb[13].mxu0 }
 0xb11   : > { %v1113_v25 = vadd.f32 %v1112_v23, %v1032_v20  ;;  %v1114_v26 = vpop.f32.mrb[14].mxu0 }
 0xb12   : > { %v1117_v27 = vmax.f32 %v1111_v22, 0.0  ;;  %v1115_v28 = vpop.f32.mrb[15].mxu0 }
 0xb13   : > { %v1118_v29 = vmax.f32 %v1113_v25, 0.0 }
 0xb14   : > { %v1119_v4 = vpack.c.bf16 %v1117_v27, %v1117_v27 }
 0xb15   : > { %v1120_v24 = vpack.c.bf16 %v1118_v29, %v1118_v29 }
 0xb17   : > { %1285 = vmatprep.mubr.bf16.mxu1 %v1120_v24 }
 0xb18   : > { %1286 = vmatmul.mubr.bf16.vlgmr.msra.gmra.mrb[12].mxu1 %v1119_v4 }
 0xbeb   : > { %v1628_v33 = vpop.f32.mrb[12].mxu1 }
 0xbec   : > { %v1629_v36 = vpop.f32.mrb[13].mxu1 }
 0xbed   : > { %v1630_v37 = vadd.f32 %v1629_v36, %v1628_v33  ;;  %v1631_v38 = vpop.f32.mrb[14].mxu1 }
 0xbee   : > { %v1632_v39 = vpop.f32.mrb[15].mxu1 }
 0xbef   : > { %v1288_v40 = vadd.f32 %v1630_v37, %v1156_v35 }
 0xbf1   : > { %v1293_v41 = vadd.f32 %v1288_v40, %v2104_v34  ;;  %v1802_v34 = vld [vmem:[%s2250_s9 + $0x10] sm:$0xff]  }
 0xbf3   : > { %v1294_v44 = vmax.f32 %v1293_v41, 0.0 }
 0xbf5   : > { %v1295_v42 = vpack.c.bf16 %v1294_v44, %v1294_v44 }
 0xbf7   : > { %1703 = vmatmul.mubr.msk.bf16.vlgmr.msra.gmra.mrb[16].mxu0 %vm555_vm2, %v1295_v42 }
 0xbf8   : > { %1707 = vmatpush3.bf16.msra.mxu0 %v1800_v30  ;;  %1714 = vmatprep.mubr.msk.bf16.mxu0 %vm1829_vm0, %v1828_v1 }
 0xbf9   : > { %1708 = vmatprep.subr.bf16.mxu0 %v1828_v1 }
 0xbfc   : > { %1709 = vmatpush3.bf16.msra.mxu0 %v1801_v43 }
 0xbfd   : > { %1710 = vmatprep.subr.bf16.mxu0 %v1828_v1 }
 0xc00   : > { %1711 = vmatpush3.bf16.msra.mxu0 %v1802_v34 }
 0xc01   : > { %1712 = vmatprep.subr.bf16.mxu0 %v1828_v1  ;;  %v1387_v1 = vsub.s32 7, %v1951_v13 }
 0xc03   : > { %v1388_v55 = vrot.slane %v1957_v15, %v1387_v1 }
 0xc04   : > { %1713 = vmatpush3.bf16.msra.mxu0 %v1803_v46 }
 0xcca   : > { %v1369_v49 = vpop.f32.mrb[16].mxu0 }
 0xccb   : > { %v1370_v12 = vadd.f32 %v1369_v49, %v1307_v48  ;;  %v1704_v50 = vpop.f32.mrb[17].mxu0 }
 0xccc   : > { %v1372_v51 = vpop.f32.mrb[18].mxu0 }
 0xccd   : > { %v1375_v52 = vmax.f32 %v1370_v12, 0.0  ;;  %v1705_v53 = vpop.f32.mrb[19].mxu0 }
 0xccf   : > { %v1376_v54 = vpack.c.bf16 %v1375_v52, %v1375_v52 }
 0xcd1   : > { %1715 = vmatmul.mubr.msk.bf16.vlgmr.msra.gmra.mrb[20].mxu0 %vm555_vm2, %v1376_v54 }
 0xda4   : > { %v1450_v56 = vpop.f32.mrb[20].mxu0 }
 0xda5   : > { %v1451_v57 = vadd.f32 %v1450_v56, %v1388_v55  ;;  %v1716_v58 = vpop.f32.mrb[21].mxu0 }
 0xda6   : > { %v1453_v59 = vpop.f32.mrb[22].mxu0 }
 0xda7   : > { %1818 = vtanh.f32 %v1451_v57  ;;  %v1717_v60 = vpop.f32.mrb[23].mxu0 }
 0xdb1   : > { %v1819_v61 = vpop.eup %1818 }
 0xdb2   : > { %1457 = vst [vmem:[%s381_s30] sm:$0xff] %v1819_v61 }
 0xdb3 PF: > { %s21_s17 = sadd.s32 1, %s1826_s17  }
 0xdb4   : > { %p18_p4 = scmp.ge.s32.totalorder %s21_s17, 4  }
 0xdb6   :  { %20 = sbr.rel (!%p18_p4) target bundleno = 1 (0x1), region = 94 }

</bundles_post_ra>
